<compile_context>
chip_gen: v7x
topology: tpu7x:2x2x1
jax: 0.10.0
libtpu: 0.0.40
codegen_flags: <defaults>
</compile_context>

<pallas_src>
import jax
import jax.numpy as jnp
from jax.experimental import pallas as pl
from jax.experimental.pallas import tpu as pltpu

_LANE = 128
_NEG_BIG = -1e30  # finite mask sentinel (avoids -inf rows -> NaN softmax)


def _round_up(n, m):
    return ((n + m - 1) // m) * m


def _pad_to(x, rows, cols):
    r, c = x.shape
    return jnp.pad(x, ((0, rows - r), (0, cols - c)))


def _gat_fused_kernel(x_ref, wt1_ref, al1_ref, ar1_ref,
                      wt2_ref, al2_ref, ar2_ref, bias_ref, out_ref):
    """Fused conv1 -> conv2 forward. Whole (small) arrays resident in VMEM, single grid step."""
    bias = bias_ref[...]  # (N, N) f32: 0.0 where an edge exists, -1e30 otherwise

    def layer(x, wt_ref, al_ref, ar_ref, num_elu):
        # Linear: bf16 MXU matmul, f32 accumulation.
        h = jnp.dot(x.astype(jnp.bfloat16), wt_ref[...],
                    preferred_element_type=jnp.float32)            # (N, Dpad) f32

        # a([h_i;h_j]) == a_left.h_i + a_right.h_j  (VPU multiply + XLU row-reduce,
        # instead of two 1-wide MXU matvecs).
        left = jnp.sum(h * al_ref[...], axis=1, keepdims=True)      # (N, 1)
        right = jnp.sum(h * ar_ref[...], axis=1, keepdims=True)     # (N, 1)
        e = left + jnp.transpose(right)                             # (N, N)

        e = jnp.where(e > 0, e, 0.2 * e)                            # LeakyReLU(0.2)
        e = e + bias                                                # mask non-edges

        # Row softmax in f32; normalize AFTER the aggregate matmul.
        m = jnp.max(e, axis=1, keepdims=True)
        p = jnp.exp(e - m)                                          # (N, N)
        inv = pl.reciprocal(jnp.sum(p, axis=1, keepdims=True), approx=True)

        agg = jnp.dot(p.astype(jnp.bfloat16), h.astype(jnp.bfloat16),
                      preferred_element_type=jnp.float32)           # (N, Dpad)
        out = agg * inv

        for _ in range(num_elu):                                    # ELU(s)
            out = jnp.where(out > 0, out, jnp.exp(jnp.minimum(out, 0.0)) - 1.0)
        return out

    # conv1 (concat=True -> ELU inside layer) followed by GAT.act ELU => 2 ELUs
    h1 = layer(x_ref[...], wt1_ref, al1_ref, ar1_ref, num_elu=2)
    # conv2 (concat=False -> no ELU)
    out_ref[...] = layer(h1, wt2_ref, al2_ref, ar2_ref, num_elu=0)


def gat_forward(x, edge_index, params):
    """Full GAT forward (eval mode).  x: (N, in_dim) f32, edge_index: (2, E) int32."""
    n, in_dim = x.shape
    hid = params["W1"].shape[0]
    out_dim = params["W2"].shape[0]

    fin_p = _round_up(in_dim, _LANE)
    d1_p = _round_up(hid, _LANE)
    d2_p = _round_up(out_dim, _LANE)

    # Additive adjacency bias: 0 on edges, large-negative elsewhere.
    bias = jnp.full((n, n), _NEG_BIG, jnp.float32)
    bias = bias.at[edge_index[0], edge_index[1]].set(0.0)

    # Lane-pad feature dims to 128 (zero padding is exact: padded h columns are
    # zero, a_left/a_right padding is zero, padded output columns sliced away).
    xp = _pad_to(x.astype(jnp.bfloat16), n, fin_p)
    wt1 = _pad_to(jnp.transpose(params["W1"]).astype(jnp.bfloat16), fin_p, d1_p)
    wt2 = _pad_to(jnp.transpose(params["W2"]).astype(jnp.bfloat16), d1_p, d2_p)
    al1 = _pad_to(params["a1"][:, :hid].astype(jnp.float32), 1, d1_p)
    ar1 = _pad_to(params["a1"][:, hid:].astype(jnp.float32), 1, d1_p)
    al2 = _pad_to(params["a2"][:, :out_dim].astype(jnp.float32), 1, d2_p)
    ar2 = _pad_to(params["a2"][:, out_dim:].astype(jnp.float32), 1, d2_p)

    vmem = pl.BlockSpec(memory_space=pltpu.MemorySpace.VMEM)
    out_p = pl.pallas_call(
        _gat_fused_kernel,
        out_shape=jax.ShapeDtypeStruct((n, d2_p), jnp.float32),
        in_specs=[vmem] * 8,
        out_specs=vmem,
    )(xp, wt1, al1, ar1, wt2, al2, ar2, bias)

    return out_p[:, :out_dim]


def _xavier_uniform(key, shape, gain):
    fan_out, fan_in = shape  # PyTorch Linear weight: (out_features, in_features)
    bound = gain * (6.0 / (fan_in + fan_out)) ** 0.5
    return jax.random.uniform(key, shape, jnp.float32, -bound, bound)


if __name__ == "__main__":
    N, IN_DIM, HIDDEN_DIM, OUT_DIM = 8, 16, 32, 8
    gain = 1.414

    key = jax.random.PRNGKey(0)
    kx, k1, k2, k3, k4 = jax.random.split(key, 5)

    x = jax.random.normal(kx, (N, IN_DIM), jnp.float32)

    # Edges: self-loops + bidirectional ring (every row has >=1 edge).
    ids = jnp.arange(N, dtype=jnp.int32)
    row = jnp.concatenate([ids, ids, ids])
    col = jnp.concatenate([ids, (ids + 1) % N, (ids - 1) % N])
    edge_index = jnp.stack([row, col])  # (2, 24)

    params = {
        "W1": _xavier_uniform(k1, (HIDDEN_DIM, IN_DIM), gain),
        "a1": _xavier_uniform(k2, (1, 2 * HIDDEN_DIM), gain),
        "W2": _xavier_uniform(k3, (OUT_DIM, HIDDEN_DIM), gain),
        "a2": _xavier_uniform(k4, (1, 2 * OUT_DIM), gain),
    }

    out = gat_forward(x, edge_index, params)
    out = jax.block_until_ready(out)

    assert out.shape == (N, OUT_DIM), out.shape
    assert bool(jnp.all(jnp.isfinite(out))), "non-finite output"
    print("KERNEL_OK")
</pallas_src>

<mosaic_0001>
module attributes {stable_mosaic.version = 11 : i64} {
  func.func @_gat_fused_kernel(%arg0: memref<8x128xbf16, #tpu.memory_space<vmem>>, %arg1: memref<128x128xbf16, #tpu.memory_space<vmem>>, %arg2: memref<1x128xf32, #tpu.memory_space<vmem>>, %arg3: memref<1x128xf32, #tpu.memory_space<vmem>>, %arg4: memref<128x128xbf16, #tpu.memory_space<vmem>>, %arg5: memref<1x128xf32, #tpu.memory_space<vmem>>, %arg6: memref<1x128xf32, #tpu.memory_space<vmem>>, %arg7: memref<8x8xf32, #tpu.memory_space<vmem>>, %arg8: memref<8x128xf32, #tpu.memory_space<vmem>>) attributes {dimension_semantics = [], scalar_prefetch = 0 : i64, scratch_operands = 0 : i64, tpu.core_type = #tpu.core_type<tc>} {
    %c0 = arith.constant 0 : index
    %c0_0 = arith.constant 0 : index
    %0 = vector.load %arg7[%c0, %c0_0] : memref<8x8xf32, #tpu.memory_space<vmem>>, vector<8x8xf32>
    %c0_1 = arith.constant 0 : index
    %c0_2 = arith.constant 0 : index
    %1 = vector.load %arg0[%c0_1, %c0_2] : memref<8x128xbf16, #tpu.memory_space<vmem>>, vector<8x128xbf16>
    %c0_3 = arith.constant 0 : index
    %c0_4 = arith.constant 0 : index
    %2 = vector.load %arg1[%c0_3, %c0_4] : memref<128x128xbf16, #tpu.memory_space<vmem>>, vector<128x128xbf16>
    %cst = arith.constant dense<0.000000e+00> : vector<8x128xf32>
    %3 = tpu.matmul %1, %2, %cst {dimension_numbers = #tpu.dot_dimension_numbers<[1], [0], [0], [1], [0, 0, 1, 1], [], []>} : vector<8x128xbf16>, vector<128x128xbf16>, vector<8x128xf32> -> vector<8x128xf32>
    %c0_5 = arith.constant 0 : index
    %c0_6 = arith.constant 0 : index
    %4 = vector.load %arg2[%c0_5, %c0_6] : memref<1x128xf32, #tpu.memory_space<vmem>>, vector<1x128xf32>
    %5 = vector.broadcast %4 : vector<1x128xf32> to vector<8x128xf32>
    %6 = arith.mulf %3, %5 : vector<8x128xf32>
    %cst_7 = arith.constant dense<0.000000e+00> : vector<8xf32>
    %7 = vector.multi_reduction <add>, %6, %cst_7 [1] : vector<8x128xf32> to vector<8xf32>
    %8 = vector.shape_cast %7 : vector<8xf32> to vector<8x1xf32>
    %c0_8 = arith.constant 0 : index
    %c0_9 = arith.constant 0 : index
    %9 = vector.load %arg3[%c0_8, %c0_9] : memref<1x128xf32, #tpu.memory_space<vmem>>, vector<1x128xf32>
    %10 = vector.broadcast %9 : vector<1x128xf32> to vector<8x128xf32>
    %11 = arith.mulf %3, %10 : vector<8x128xf32>
    %cst_10 = arith.constant dense<0.000000e+00> : vector<8xf32>
    %12 = vector.multi_reduction <add>, %11, %cst_10 [1] : vector<8x128xf32> to vector<8xf32>
    %13 = vector.shape_cast %12 : vector<8xf32> to vector<8x1xf32>
    %14 = tpu.transpose %13, [1, 0] : vector<8x1xf32> -> vector<1x8xf32>
    %15 = vector.broadcast %8 : vector<8x1xf32> to vector<8x8xf32>
    %16 = vector.broadcast %14 : vector<1x8xf32> to vector<8x8xf32>
    %17 = arith.addf %15, %16 : vector<8x8xf32>
    %cst_11 = arith.constant 0.000000e+00 : f32
    %18 = vector.broadcast %cst_11 : f32 to vector<8x8xf32>
    %19 = arith.cmpf ogt, %17, %18 : vector<8x8xf32>
    %cst_12 = arith.constant 2.000000e-01 : f32
    %20 = vector.broadcast %cst_12 : f32 to vector<8x8xf32>
    %21 = arith.mulf %20, %17 : vector<8x8xf32>
    %22 = arith.select %19, %17, %21 : vector<8x8xi1>, vector<8x8xf32>
    %23 = arith.addf %22, %0 : vector<8x8xf32>
    %cst_13 = arith.constant dense<0xFF800000> : vector<8xf32>
    %24 = vector.multi_reduction <maximumf>, %23, %cst_13 [1] : vector<8x8xf32> to vector<8xf32>
    %25 = vector.shape_cast %24 : vector<8xf32> to vector<8x1xf32>
    %26 = vector.broadcast %25 : vector<8x1xf32> to vector<8x8xf32>
    %27 = arith.subf %23, %26 : vector<8x8xf32>
    %28 = math.exp %27 : vector<8x8xf32>
    %cst_14 = arith.constant dense<0.000000e+00> : vector<8xf32>
    %29 = vector.multi_reduction <add>, %28, %cst_14 [1] : vector<8x8xf32> to vector<8xf32>
    %30 = vector.shape_cast %29 : vector<8xf32> to vector<8x1xf32>
    %31 = tpu.reciprocal %30 {approx = true} : vector<8x1xf32> -> vector<8x1xf32>
    %32 = arith.truncf %28 : vector<8x8xf32> to vector<8x8xbf16>
    %33 = arith.truncf %3 : vector<8x128xf32> to vector<8x128xbf16>
    %cst_15 = arith.constant dense<0.000000e+00> : vector<8x128xf32>
    %34 = tpu.matmul %32, %33, %cst_15 {dimension_numbers = #tpu.dot_dimension_numbers<[1], [0], [0], [1], [0, 0, 1, 1], [], []>} : vector<8x8xbf16>, vector<8x128xbf16>, vector<8x128xf32> -> vector<8x128xf32>
    %35 = vector.broadcast %31 : vector<8x1xf32> to vector<8x128xf32>
    %36 = arith.mulf %34, %35 : vector<8x128xf32>
    %cst_16 = arith.constant 0.000000e+00 : f32
    %37 = vector.broadcast %cst_16 : f32 to vector<8x128xf32>
    %38 = arith.cmpf ogt, %36, %37 : vector<8x128xf32>
    %cst_17 = arith.constant 0.000000e+00 : f32
    %39 = vector.broadcast %cst_17 : f32 to vector<8x128xf32>
    %40 = arith.minimumf %36, %39 : vector<8x128xf32>
    %41 = math.exp %40 : vector<8x128xf32>
    %cst_18 = arith.constant 1.000000e+00 : f32
    %42 = vector.broadcast %cst_18 : f32 to vector<8x128xf32>
    %43 = arith.subf %41, %42 : vector<8x128xf32>
    %44 = arith.select %38, %36, %43 : vector<8x128xi1>, vector<8x128xf32>
    %cst_19 = arith.constant 0.000000e+00 : f32
    %45 = vector.broadcast %cst_19 : f32 to vector<8x128xf32>
    %46 = arith.cmpf ogt, %44, %45 : vector<8x128xf32>
    %cst_20 = arith.constant 0.000000e+00 : f32
    %47 = vector.broadcast %cst_20 : f32 to vector<8x128xf32>
    %48 = arith.minimumf %44, %47 : vector<8x128xf32>
    %49 = math.exp %48 : vector<8x128xf32>
    %cst_21 = arith.constant 1.000000e+00 : f32
    %50 = vector.broadcast %cst_21 : f32 to vector<8x128xf32>
    %51 = arith.subf %49, %50 : vector<8x128xf32>
    %52 = arith.select %46, %44, %51 : vector<8x128xi1>, vector<8x128xf32>
    %53 = arith.truncf %52 : vector<8x128xf32> to vector<8x128xbf16>
    %c0_22 = arith.constant 0 : index
    %c0_23 = arith.constant 0 : index
    %54 = vector.load %arg4[%c0_22, %c0_23] : memref<128x128xbf16, #tpu.memory_space<vmem>>, vector<128x128xbf16>
    %cst_24 = arith.constant dense<0.000000e+00> : vector<8x128xf32>
    %55 = tpu.matmul %53, %54, %cst_24 {dimension_numbers = #tpu.dot_dimension_numbers<[1], [0], [0], [1], [0, 0, 1, 1], [], []>} : vector<8x128xbf16>, vector<128x128xbf16>, vector<8x128xf32> -> vector<8x128xf32>
    %c0_25 = arith.constant 0 : index
    %c0_26 = arith.constant 0 : index
    %56 = vector.load %arg5[%c0_25, %c0_26] : memref<1x128xf32, #tpu.memory_space<vmem>>, vector<1x128xf32>
    %57 = vector.broadcast %56 : vector<1x128xf32> to vector<8x128xf32>
    %58 = arith.mulf %55, %57 : vector<8x128xf32>
    %cst_27 = arith.constant dense<0.000000e+00> : vector<8xf32>
    %59 = vector.multi_reduction <add>, %58, %cst_27 [1] : vector<8x128xf32> to vector<8xf32>
    %60 = vector.shape_cast %59 : vector<8xf32> to vector<8x1xf32>
    %c0_28 = arith.constant 0 : index
    %c0_29 = arith.constant 0 : index
    %61 = vector.load %arg6[%c0_28, %c0_29] : memref<1x128xf32, #tpu.memory_space<vmem>>, vector<1x128xf32>
    %62 = vector.broadcast %61 : vector<1x128xf32> to vector<8x128xf32>
    %63 = arith.mulf %55, %62 : vector<8x128xf32>
    %cst_30 = arith.constant dense<0.000000e+00> : vector<8xf32>
    %64 = vector.multi_reduction <add>, %63, %cst_30 [1] : vector<8x128xf32> to vector<8xf32>
    %65 = vector.shape_cast %64 : vector<8xf32> to vector<8x1xf32>
    %66 = tpu.transpose %65, [1, 0] : vector<8x1xf32> -> vector<1x8xf32>
    %67 = vector.broadcast %60 : vector<8x1xf32> to vector<8x8xf32>
    %68 = vector.broadcast %66 : vector<1x8xf32> to vector<8x8xf32>
    %69 = arith.addf %67, %68 : vector<8x8xf32>
    %cst_31 = arith.constant 0.000000e+00 : f32
    %70 = vector.broadcast %cst_31 : f32 to vector<8x8xf32>
    %71 = arith.cmpf ogt, %69, %70 : vector<8x8xf32>
    %cst_32 = arith.constant 2.000000e-01 : f32
    %72 = vector.broadcast %cst_32 : f32 to vector<8x8xf32>
    %73 = arith.mulf %72, %69 : vector<8x8xf32>
    %74 = arith.select %71, %69, %73 : vector<8x8xi1>, vector<8x8xf32>
    %75 = arith.addf %74, %0 : vector<8x8xf32>
    %cst_33 = arith.constant dense<0xFF800000> : vector<8xf32>
    %76 = vector.multi_reduction <maximumf>, %75, %cst_33 [1] : vector<8x8xf32> to vector<8xf32>
    %77 = vector.shape_cast %76 : vector<8xf32> to vector<8x1xf32>
    %78 = vector.broadcast %77 : vector<8x1xf32> to vector<8x8xf32>
    %79 = arith.subf %75, %78 : vector<8x8xf32>
    %80 = math.exp %79 : vector<8x8xf32>
    %cst_34 = arith.constant dense<0.000000e+00> : vector<8xf32>
    %81 = vector.multi_reduction <add>, %80, %cst_34 [1] : vector<8x8xf32> to vector<8xf32>
    %82 = vector.shape_cast %81 : vector<8xf32> to vector<8x1xf32>
    %83 = tpu.reciprocal %82 {approx = true} : vector<8x1xf32> -> vector<8x1xf32>
    %84 = arith.truncf %80 : vector<8x8xf32> to vector<8x8xbf16>
    %85 = arith.truncf %55 : vector<8x128xf32> to vector<8x128xbf16>
    %cst_35 = arith.constant dense<0.000000e+00> : vector<8x128xf32>
    %86 = tpu.matmul %84, %85, %cst_35 {dimension_numbers = #tpu.dot_dimension_numbers<[1], [0], [0], [1], [0, 0, 1, 1], [], []>} : vector<8x8xbf16>, vector<8x128xbf16>, vector<8x128xf32> -> vector<8x128xf32>
    %87 = vector.broadcast %83 : vector<8x1xf32> to vector<8x128xf32>
    %88 = arith.mulf %86, %87 : vector<8x128xf32>
    %c0_36 = arith.constant 0 : index
    %c0_37 = arith.constant 0 : index
    %89 = vector.load %arg8[%c0_36, %c0_37] : memref<8x128xf32, #tpu.memory_space<vmem>>, vector<8x128xf32>
    tpu.vector_store %arg8[%c0_36, %c0_37], %88 {strides = array<i32>} : memref<8x128xf32, #tpu.memory_space<vmem>>, vector<8x128xf32>,
    return
  }
}

</mosaic_0001>

<bundles_post_ra>
// kernel: tpu_custom_call.1
= control target key start
LH: loop header
LB: loop body
LE: loop exit
PB: predicated region body
PF: predicated region fallthrough
CT: control target
= control target key end

     0   :  { %13 = vsyncpa [#allocation3], 0  ;;  %s947_s0 = inlined_call_operand.hbm [shape: bf16[8,128], index: 0, kind: input, shape index: {}]   ;;  %s948_s1 = inlined_call_operand.hbm [shape: bf16[128,128], index: 1, kind: input, shape index: {}]   ;;  %s949_s2 = inlined_call_operand.vmem [shape: f32[1,128], index: 2, kind: input, shape index: {}]   ;;  %s950_s3 = inlined_call_operand.vmem [shape: f32[1,128], index: 3, kind: input, shape index: {}]   ;;  %s951_s4 = inlined_call_operand.hbm [shape: bf16[128,128], index: 4, kind: input, shape index: {}]   ;;  %s952_s5 = inlined_call_operand.vmem [shape: f32[1,128], index: 5, kind: input, shape index: {}]   ;;  %s953_s6 = inlined_call_operand.vmem [shape: f32[1,128], index: 6, kind: input, shape index: {}]   ;;  %s954_s7 = inlined_call_operand.vmem [shape: f32[8,8], index: 7, kind: input, shape index: {}]   ;;  %s955_s8 = inlined_call_operand.hbm [shape: f32[8,128], index: 8, kind: output, shape index: {}]  }
   0x1   :  { %14 = vsyncpa [#allocation6], 0 }
   0x2   :  { %15 = vsyncpa [#allocation4], 0  ;;  %s780_s27 = smov [#allocation5]   ;;  %s686_s9 = scalar_lea.hbm %s948_s1, 1024 }
   0x3   :  { %s31_s28 = sshll.u32 %s780_s27, 4  ;;  %p687_p0 = scmp.ne.s32.totalorder %s948_s1, %s686_s9  ;;  %s32_s28 = int_to_ptr.vmem [resolvable:$true] %s31_s28 }
   0x4   :  { %p690_p1 = scmp.lt.u32.totalorder %s686_s9, %s948_s1 }
   0x6   :  { %p692_p2 = pnand %p690_p1, %p687_p0 }
   0x8   :  { %695 = shalt.err (!%p692_p2)
}
   0x9   :  { %s696_s14 = scalar_lea.vmem %s32_s28, 1024  ;;  %p701_p4 = scmp.lt.s32.totalorder %s32_s28, %s32_s28 }
   0xa   :  { %p697_p3 = scmp.ne.s32.totalorder %s32_s28, %s696_s14  ;;  %p702_p5 = scmp.lt.s32.totalorder %s696_s14, %s696_s14 }
   0xc   :  { %p703_p6 = por %p702_p5, %p701_p4 }
   0xe   :  { %p704_p7 = pnand %p703_p6, %p697_p3 }
  0x10   :  { %707 = shalt.err (!%p704_p7)
}
  0x11   :  { %s781_s15 = smov 64   ;;  %s782_s16 = smov 4  }
  0x12   :  { %37 = dma.hbm_to_vmem [thread:$0]  %s948_s1, 1024, %s32_s28, [#allocation6], %s781_s15, %s781_s15, %s782_s16  }
  0x13   :  { %s783_s19 = smov [#allocation2]   ;;  %s784_s21 = smov [#allocation7]  }
  0x14   :  { %s22_s20 = sshll.u32 %s783_s19, 4  ;;  %s47_s22 = sshll.u32 %s784_s21, 4  ;;  %s23_s20 = int_to_ptr.vmem [resolvable:$true] %s22_s20  ;;  %s48_s22 = int_to_ptr.vmem [resolvable:$true] %s47_s22 }
  0x15   :  { %s708_s25 = scalar_lea.hbm %s947_s0, 64 }
  0x16   :  { %p709_p8 = scmp.ne.s32.totalorder %s947_s0, %s708_s25  ;;  %p712_p9 = scmp.lt.u32.totalorder %s708_s25, %s947_s0 }
  0x18   :  { %p714_p10 = pnand %p712_p9, %p709_p8 }
  0x1a   :  { %717 = shalt.err (!%p714_p10)
}
  0x1b   :  { %s718_s1 = scalar_lea.vmem %s23_s20, 64  ;;  %p723_p12 = scmp.lt.s32.totalorder %s23_s20, %s23_s20 }
  0x1c   :  { %p719_p11 = scmp.ne.s32.totalorder %s23_s20, %s718_s1  ;;  %p724_p13 = scmp.lt.s32.totalorder %s718_s1, %s718_s1 }
  0x1e   :  { %p725_p0 = por %p724_p13, %p723_p12 }
  0x20   :  { %p726_p1 = pnand %p725_p0, %p719_p11 }
  0x22   :  { %729 = shalt.err (!%p726_p1)
}
  0x23   :  { %25 = dma.hbm_to_vmem [thread:$0]  %s947_s0, 64, %s23_s20, [#allocation3]  }
  0x24   :  { %s730_s12 = scalar_lea.hbm %s951_s4, 1024 }
  0x25   :  { %p731_p2 = scmp.ne.s32.totalorder %s951_s4, %s730_s12  ;;  %p734_p3 = scmp.lt.u32.totalorder %s730_s12, %s951_s4 }
  0x27   :  { %p736_p4 = pnand %p734_p3, %p731_p2 }
  0x29   :  { %739 = shalt.err (!%p736_p4)
}
  0x2a   :  { %s740_s19 = scalar_lea.vmem %s48_s22, 1024  ;;  %p745_p6 = scmp.lt.s32.totalorder %s48_s22, %s48_s22 }
  0x2b   :  { %p741_p5 = scmp.ne.s32.totalorder %s48_s22, %s740_s19  ;;  %p746_p7 = scmp.lt.s32.totalorder %s740_s19, %s740_s19 }
  0x2d   :  { %p747_p8 = por %p746_p7, %p745_p6 }
  0x2f   :  { %p748_p9 = pnand %p747_p8, %p741_p5 }
  0x31   :  { %751 = shalt.err (!%p748_p9)
}
  0x32   :  { %53 = dma.hbm_to_vmem [thread:$0]  %s951_s4, 1024, %s48_s22, [#allocation6], %s781_s15, %s781_s15, %s782_s16  }
  0x33   :  { %774 = dma.done.wait [#allocation3], 64  }
  0x34   :  { %775 = vsyncadd [#allocation3], 4294967232 }
  0x35   :  { %776 = dma.done.wait [#allocation6], 2048  }
  0x36   :  { %777 = vsyncadd [#allocation6], 4294965248  ;;  %v785_v0 = vmov 0.0   ;;  %vm786_vm0 = vmmov 0   ;;  %v658_v1 = vld [vmem:[#allocation5] sm:$0xff]   ;;  %v659_v2 = vld [vmem:[#allocation5 + $0x8] sm:$0xff]   ;;  %v228_v21 = vlaneseq }
  0x37   :  { %598 = vmatprep.subr.bf16.mxu0 %v785_v0  ;;  %614 = vmatprep.mubr.msk.bf16.mxu0 %vm786_vm0, %v785_v0  ;;  %v660_v3 = vld [vmem:[#allocation5 + $0x10] sm:$0xff]   ;;  %v661_v4 = vld [vmem:[#allocation5 + $0x18] sm:$0xff]   ;;  %v662_v5 = vld [vmem:[#allocation5 + $0x20] sm:$0xff]   ;;  %vm253_vm1 = vcmask 1043456   ;;  %vm237_vm3 = vcmask 64512  }
  0x38   :  { %618 = vmatprep.subr.bf16.mxu1 %v785_v0  ;;  %620 = vmatprep.mubr.msk.bf16.mxu1 %vm786_vm0, %v785_v0  ;;  %v663_v6 = vld [vmem:[#allocation5 + $0x28] sm:$0xff]   ;;  %v664_v7 = vld [vmem:[#allocation5 + $0x30] sm:$0xff]   ;;  %v665_v8 = vld [vmem:[#allocation5 + $0x38] sm:$0xff]   ;;  %v899_v22 = vshrl.u32 %v228_v21, 7 }
  0x39   :  { %599 = vmatpush3.bf16.msra.mxu0 %v658_v1  ;;  %v71_v9 = vld [vmem:[#allocation2] sm:$0xf]  ;;  %v561_v10 = vld [vmem:[%s950_s3] ss:$0 sm:$0xff]  ;;  %v666_v39 = vld [vmem:[#allocation7] sm:$0xff]  }
  0x3a   :  { %600 = vmatprep.subr.bf16.mxu0 %v785_v0  ;;  %v560_v16 = vld [vmem:[%s949_s2] ss:$0 sm:$0xff]  ;;  %v230_v23 = vsub.s32 0, %v899_v22  ;;  %v667_v40 = vld [vmem:[#allocation7 + $0x8] sm:$0xff]   ;;  %v669_v42 = vld [vmem:[#allocation7 + $0x18] sm:$0xff]  }
  0x3b   :  { %v907_v29 = vld [vmem:[%s954_s7] sm:$0xff]  ;;  %v670_v43 = vld [vmem:[#allocation7 + $0x20] sm:$0xff]   ;;  %v671_v44 = vld [vmem:[#allocation7 + $0x28] sm:$0xff]  }
  0x3c   :  { %v668_v41 = vld [vmem:[#allocation7 + $0x10] sm:$0xff]   ;;  %v673_v46 = vld [vmem:[#allocation7 + $0x38] sm:$0xff]  }
  0x3d   :  { %601 = vmatpush3.bf16.msra.mxu0 %v659_v2  ;;  %v672_v45 = vld [vmem:[#allocation7 + $0x30] sm:$0xff]  }
  0x3e   :  { %602 = vmatprep.subr.bf16.mxu0 %v785_v0  ;;  %v574_v1 = vld [vmem:[%s953_s6] ss:$0 sm:$0xff] }
  0x41   :  { %603 = vmatpush3.bf16.msra.mxu0 %v660_v3 }
  0x42   :  { %604 = vmatprep.subr.bf16.mxu0 %v785_v0 }
  0x45   :  { %605 = vmatpush3.bf16.msra.mxu0 %v661_v4 }
  0x46   :  { %606 = vmatprep.subr.bf16.mxu0 %v785_v0 }
  0x49   :  { %607 = vmatpush3.bf16.msra.mxu0 %v662_v5 }
  0x4a   :  { %608 = vmatprep.subr.bf16.mxu0 %v785_v0 }
  0x4d   :  { %609 = vmatpush3.bf16.msra.mxu0 %v663_v6 }
  0x4e   :  { %610 = vmatprep.subr.bf16.mxu0 %v785_v0 }
  0x51   :  { %611 = vmatpush3.bf16.msra.mxu0 %v664_v7  ;;  %v573_v7 = vld [vmem:[%s952_s5] ss:$0 sm:$0xff]  ;;  %s787_s5 = smov [#allocation8]  }
  0x52   :  { %612 = vmatprep.subr.bf16.mxu0 %v785_v0  ;;  %s542_s6 = sshll.u32 %s787_s5, 4  ;;  %s543_s6 = int_to_ptr.vmem [resolvable:$true] %s542_s6 }
  0x53   :  { %s752_s25 = scalar_lea.vmem %s543_s6, 128  ;;  %p757_p11 = scmp.lt.s32.totalorder %s543_s6, %s543_s6 }
  0x54   :  { %p753_p10 = scmp.ne.s32.totalorder %s543_s6, %s752_s25  ;;  %p758_p12 = scmp.lt.s32.totalorder %s752_s25, %s752_s25 }
  0x55   :  { %613 = vmatpush3.bf16.msra.mxu0 %v665_v8 }
  0x56   :  { %644 = vmatprep.subr.bf16.mxu0 %v785_v0  ;;  %p759_p13 = por %p758_p12, %p757_p11 }
  0x58   :  { %615 = vmatmul.mubr.bf16.vlgmr.msra.gmra.mrb[0].mxu0 %v71_v9  ;;  %p760_p0 = pnand %p759_p13, %p753_p10 }
  0x59   :  { %646 = vmatprep.mubr.msk.bf16.mxu0 %vm786_vm0, %v785_v0 }
 0x12b   :  { %v170_v11 = vpop.f32.mrb[0].mxu0 }
 0x12c   :  { %v616_v12 = vpop.f32.mrb[1].mxu0  ;;  %v193_v13 = vmul.f32 %v561_v10, %v170_v11  ;;  %v249_v14 = vpack.c.bf16 %v170_v11, %v170_v11  ;;  %v183_v19 = vmul.f32 %v560_v16, %v170_v11 }
 0x12d   :  { %v173_v15 = vpop.f32.mrb[2].mxu0 }
 0x12e   :  { %194 = vadd.xlane.f32.xlu0 %v193_v13  ;;  %v617_v17 = vpop.f32.mrb[3].mxu0  ;;  %v255_v18 = vsel %vm253_vm1, %v249_v14, 0 }
 0x12f   :  { %619 = vmatpush3.bf16.msra.mxu1 %v255_v18 }
 0x130   :  { %624 = vmatprep.subr.bf16.mxu1 %v785_v0 }
 0x132   :  { %184 = vadd.xlane.f32.xlu0 %v183_v19 }
 0x1bb   :  { %v195_v20 = vpop.xlane.xlu0 %194 }
 0x1bc   :  { %196 = vxpose.xlu1.b32.start.end [1/1] (short) (narrow) %v195_v20, 8 }
 0x1bf   :  { %v185_v26 = vpop.xlane.xlu0 %184 }
 0x23c   :  { %v212_v24 = vpop.trf.xlu1 }
 0x23d   :  { %v231_v25 = vrot.slane %v212_v24, %v230_v23 }
 0x23f   :  { %v232_v27 = vadd.f32 %v231_v25, %v185_v26 }
 0x241   :  { %v234_v28 = vmul.f32 0.2, %v232_v27  ;;  %vm233_vm2 = vcmp.gt.f32.partialorder %v232_v27, 0.0 }
 0x243   :  { %v235_v30 = vsel %vm233_vm2, %v232_v27, %v234_v28 }
 0x244   :  { %v236_v31 = vadd.f32 %v235_v30, %v907_v29 }
 0x246   :  { %v238_v32 = vsel %vm237_vm3, %v236_v31, -inf }
 0x247   :  { %239 = vmax.xlane.f32.xlu1 %v238_v32 }
 0x2d4   :  { %v240_v33 = vpop.xlane.xlu1 %239 }
 0x2d5   :  { %v241_v34 = vsub.f32 %v236_v31, %v240_v33 }
 0x2d7   :  { %v242_v35 = vmul.f32 1.442695, %v241_v34 }
 0x2d9   :  { %674 = vpow2.f32 %v242_v35 }
 0x2e3   :  { %v675_v36 = vpop.eup %674 }
 0x2e4   :  { %v244_v37 = vsel %vm237_vm3, %v675_v36, 0.0  ;;  %v248_v38 = vpack.c.bf16 %v675_v36, %v675_v36 }
 0x2e5   :  { %245 = vadd.xlane.f32.xlu0 %v244_v37 }
 0x2e6   :  { %621 = vmatmul.mubr.msk.bf16.vlgmr.msra.gmra.mrb[0].mxu1 %vm237_vm3, %v248_v38 }
 0x2e7   :  { %640 = vmatprep.mubr.msk.bf16.mxu1 %vm786_vm0, %v785_v0  ;;  %625 = vmatpush3.bf16.msra.mxu1 %v666_v39 }
 0x2e8   :  { %626 = vmatprep.subr.bf16.mxu1 %v785_v0 }
 0x2eb   :  { %627 = vmatpush3.bf16.msra.mxu1 %v667_v40 }
 0x2ec   :  { %628 = vmatprep.subr.bf16.mxu1 %v785_v0 }
 0x2ef   :  { %629 = vmatpush3.bf16.msra.mxu1 %v668_v41 }
 0x2f0   :  { %630 = vmatprep.subr.bf16.mxu1 %v785_v0 }
 0x2f3   :  { %631 = vmatpush3.bf16.msra.mxu1 %v669_v42 }
 0x2f4   :  { %632 = vmatprep.subr.bf16.mxu1 %v785_v0 }
 0x2f7   :  { %633 = vmatpush3.bf16.msra.mxu1 %v670_v43 }
 0x2f8   :  { %634 = vmatprep.subr.bf16.mxu1 %v785_v0 }
 0x2fb   :  { %635 = vmatpush3.bf16.msra.mxu1 %v671_v44 }
 0x2fc   :  { %636 = vmatprep.subr.bf16.mxu1 %v785_v0 }
 0x2ff   :  { %637 = vmatpush3.bf16.msra.mxu1 %v672_v45 }
 0x300   :  { %638 = vmatprep.subr.bf16.mxu1 %v785_v0 }
 0x303   :  { %639 = vmatpush3.bf16.msra.mxu1 %v673_v46 }
 0x372   :  { %v246_v47 = vpop.xlane.xlu0 %245 }
 0x373   :  { %676 = vrcp.f32 %v246_v47 }
 0x37d   :  { %v677_v48 = vpop.eup %676 }
 0x3b9   :  { %v291_v49 = vpop.f32.mrb[0].mxu1 }
 0x3ba   :  { %v297_v50 = vmul.f32 %v677_v48, %v291_v49  ;;  %v622_v51 = vpop.f32.mrb[1].mxu1 }
 0x3bb   :  { %v294_v52 = vpop.f32.mrb[2].mxu1 }
 0x3bc   :  { %v299_v53 = vmin.f32 %v297_v50, 0.0  ;;  %v623_v54 = vpop.f32.mrb[3].mxu1  ;;  %vm298_vm4 = vcmp.gt.f32.partialorder %v297_v50, 0.0 }
 0x3be   :  { %v300_v55 = vmul.f32 1.442695, %v299_v53 }
 0x3c0   :  { %678 = vpow2.f32 %v300_v55 }
 0x3ca   :  { %v679_v56 = vpop.eup %678 }
 0x3cb   :  { %v563_v57 = vadd.f32 -1.0, %v679_v56 }
 0x3cd   :  { %v303_v58 = vsel %vm298_vm4, %v297_v50, %v563_v57 }
 0x3ce   :  { %v305_v59 = vmin.f32 %v303_v58, 0.0  ;;  %vm304_vm5 = vcmp.gt.f32.partialorder %v303_v58, 0.0 }
 0x3d0   :  { %v306_v60 = vmul.f32 1.442695, %v305_v59 }
 0x3d2   :  { %680 = vpow2.f32 %v306_v60 }
 0x3dc   :  { %v681_v61 = vpop.eup %680 }
 0x3dd   :  { %v564_v62 = vadd.f32 -1.0, %v681_v61 }
 0x3df   :  { %v309_v63 = vsel %vm304_vm5, %v303_v58, %v564_v62 }
 0x3e0   :  { %v310_v0 = vpack.c.bf16 %v309_v63, %v309_v63 }
 0x3e2   :  { %641 = vmatmul.mubr.bf16.vlgmr.msra.gmra.mrb[4].mxu1 %v310_v0 }
 0x4b5   :  { %v409_v2 = vpop.f32.mrb[4].mxu1 }
 0x4b6   :  { %v487_v3 = vpack.c.bf16 %v409_v2, %v409_v2  ;;  %v642_v4 = vpop.f32.mrb[5].mxu1  ;;  %v432_v5 = vmul.f32 %v574_v1, %v409_v2  ;;  %v422_v10 = vmul.f32 %v573_v7, %v409_v2 }
 0x4b7   :  { %v412_v6 = vpop.f32.mrb[6].mxu1 }
 0x4b8   :  { %433 = vadd.xlane.f32.xlu0 %v432_v5  ;;  %v643_v8 = vpop.f32.mrb[7].mxu1  ;;  %v492_v9 = vsel %vm253_vm1, %v487_v3, 0 }
 0x4b9   :  { %645 = vmatpush3.bf16.msra.mxu0 %v492_v9 }
 0x4bc   :  { %423 = vadd.xlane.f32.xlu0 %v422_v10 }
 0x545   :  { %v434_v11 = vpop.xlane.xlu0 %433 }
 0x546   :  { %435 = vxpose.xlu0.b32.start.end [1/1] (short) (narrow) %v434_v11, 8 }
 0x549   :  { %v424_v12 = vpop.xlane.xlu0 %423 }
 0x5c6   :  { %v451_v13 = vpop.trf.xlu0 }
 0x5c7   :  { %v470_v14 = vrot.slane %v451_v13, %v230_v23 }
 0x5c9   :  { %v471_v15 = vadd.f32 %v470_v14, %v424_v12 }
 0x5cb   :  { %v473_v16 = vmul.f32 0.2, %v471_v15  ;;  %vm472_vm6 = vcmp.gt.f32.partialorder %v471_v15, 0.0 }
 0x5cd   :  { %v474_v17 = vsel %vm472_vm6, %v471_v15, %v473_v16 }
 0x5ce   :  { %v475_v18 = vadd.f32 %v474_v17, %v907_v29 }
 0x5d0   :  { %v476_v19 = vsel %vm237_vm3, %v475_v18, -inf }
 0x5d1   :  { %477 = vmax.xlane.f32.xlu1 %v476_v19 }
 0x65e   :  { %v478_v20 = vpop.xlane.xlu1 %477 }
 0x65f   :  { %v479_v21 = vsub.f32 %v475_v18, %v478_v20 }
 0x661   :  { %v480_v24 = vmul.f32 1.442695, %v479_v21 }
 0x663   :  { %682 = vpow2.f32 %v480_v24 }
 0x66d   :  { %v683_v25 = vpop.eup %682 }
 0x66e   :  { %v482_v26 = vsel %vm237_vm3, %v683_v25, 0.0  ;;  %v486_v27 = vpack.c.bf16 %v683_v25, %v683_v25 }
 0x66f   :  { %483 = vadd.xlane.f32.xlu1 %v482_v26 }
 0x670   :  { %647 = vmatmul.mubr.msk.bf16.vlgmr.msra.gmra.mrb[4].mxu0 %vm237_vm3, %v486_v27 }
 0x6fc   :  { %v484_v22 = vpop.xlane.xlu1 %483 }
 0x6fd   :  { %684 = vrcp.f32 %v484_v22 }
 0x707   :  { %v685_v23 = vpop.eup %684 }
 0x743   :  { %v528_v28 = vpop.f32.mrb[4].mxu0 }
 0x744   :  { %v534_v29 = vmul.f32 %v685_v23, %v528_v28  ;;  %v648_v30 = vpop.f32.mrb[5].mxu0 }
 0x745   :  { %v531_v31 = vpop.f32.mrb[6].mxu0 }
 0x746   :  { %535 = vst [vmem:[#allocation8] sm:$0xff] %v534_v29  ;;  %v649_v32 = vpop.f32.mrb[7].mxu0 }
 0x747   :  { %763 = shalt.err (!%p760_p0)
}
 0x748   :  { %s764_s29 = scalar_lea.hbm %s955_s8, 128 }
 0x749   :  { %p765_p1 = scmp.ne.s32.totalorder %s955_s8, %s764_s29  ;;  %p768_p2 = scmp.lt.u32.totalorder %s764_s29, %s955_s8 }
 0x74b   :  { %p770_p3 = pnand %p768_p2, %p765_p1 }
 0x74d   :  { %773 = shalt.err (!%p770_p3)
}
 0x74e   :  { %545 = dma.vmem_to_hbm [thread:$0]  %s543_s6, 128, %s955_s8, [#allocation4]  }
 0x74f   :  { %778 = dma.done.wait [#allocation4], 128  }
 0x750   :  { %779 = vsyncadd [#allocation4], 4294967168 }
 0x751   :  { %549 = vsyncpa [#allocation3], 1 }
 0x752   :  { %550 = vsyncpa [#allocation6], 1 }
 0x753   :  { %551 = vsyncpa [#allocation4], 1 }

</bundles_post_ra>
